<compile_context>
chip_gen: v5e
topology: v5e:2x2
jax: 0.10.0
libtpu: 0.0.40
codegen_flags: <defaults>
</compile_context>

<pallas_src>
import functools

import jax
import jax.numpy as jnp
from jax.experimental import pallas as pl
from jax.experimental.pallas import tpu as pltpu

N_EMBED = 128
HIDDEN = 4 * N_EMBED


def expert_kernel(x_ref, w1_ref, b1_ref, w2_ref, b2_ref, o_ref):
    # In-kernel cast of the activation tile to the weight dtype (bf16): cheap
    # VPU work hidden under the MXU, avoids a wrapper-side astype HBM round trip.
    x = x_ref[...].astype(w1_ref.dtype)
    # First linear: bf16 inputs, f32 accumulate on the MXU.
    h = jnp.dot(x, w1_ref[...], preferred_element_type=jnp.float32)
    # bf16 epilogue: bias + ReLU on the (tm, HIDDEN) activation in bf16 feeds
    # the second dot directly (accuracy delta << bf16 matmul quantization noise).
    h = jnp.maximum(h.astype(b1_ref.dtype) + b1_ref[...], 0)
    # Second linear: bf16 inputs, f32 accumulate; bias add + store in f32.
    y = jnp.dot(h, w2_ref[...], preferred_element_type=jnp.float32)
    o_ref[...] = (y + b2_ref[...]).astype(o_ref.dtype)


def _round_up(n, m):
    return ((n + m - 1) // m) * m


@functools.partial(jax.jit, static_argnames=("tm",))
def expert_forward(x, w1, b1, w2, b2, *, tm=1024):
    """x: (..., n_embed) -> (..., n_embed), matching torch's Linear-on-last-dim.

    Expects w1/b1/w2 already in bf16 and b2 in f32 (see prepare_expert_params);
    casting once at init avoids per-call weight casts.
    """
    orig_shape = x.shape
    d = orig_shape[-1]
    hid = w1.shape[-1]
    x2d = x.reshape(-1, d)                     # metadata-only reshape, no copy
    n_tok = x2d.shape[0]

    # --- token-tile selection (static Python ints under jit) -------------------
    # Big tile to amortize the ~0.35us per-grid-step overhead and fill the MXU
    # M axis. Split into 2 steps only when each half keeps >= 256 rows, so
    # dual-TC chips (v7x) get work from both cores without shrinking tiles into
    # the overhead-dominated regime; small workloads use a single grid step.
    eff_tm = min(tm, n_tok)
    if n_tok <= tm and n_tok >= 512:
        eff_tm = pl.cdiv(n_tok, 2)
    eff_tm = max(16, _round_up(eff_tm, 16))    # bf16 native (16,128) sublane tile
    grid = pl.cdiv(n_tok, eff_tm)              # partial last block handled by Pallas

    flops = 4 * n_tok * d * hid                # 2 matmuls, 2*M*K*N each
    bytes_accessed = (
        n_tok * d * (x2d.dtype.itemsize + jnp.dtype(x.dtype).itemsize)  # x read + out write
        + 2 * d * hid * 2                                               # bf16 W1 + W2
        + hid * 2 + d * 4                                               # biases
    )

    out = pl.pallas_call(
        expert_kernel,
        out_shape=jax.ShapeDtypeStruct((n_tok, d), x.dtype),
        grid_spec=pltpu.PrefetchScalarGridSpec(
            num_scalar_prefetch=0,
            grid=(grid,),
            in_specs=[
                pl.BlockSpec((eff_tm, d), lambda i: (i, 0)),   # x tile (f32)
                pl.BlockSpec((d, hid), lambda i: (0, 0)),      # W1 (VMEM-resident, bf16)
                pl.BlockSpec((1, hid), lambda i: (0, 0)),      # b1 (bf16)
                pl.BlockSpec((hid, d), lambda i: (0, 0)),      # W2 (VMEM-resident, bf16)
                pl.BlockSpec((1, d), lambda i: (0, 0)),        # b2 (f32)
            ],
            out_specs=pl.BlockSpec((eff_tm, d), lambda i: (i, 0)),
        ),
        compiler_params=pltpu.CompilerParams(
            dimension_semantics=("parallel",),
        ),
        cost_estimate=pl.CostEstimate(
            flops=flops, transcendentals=0, bytes_accessed=bytes_accessed),
    )(x2d, w1, b1, w2, b2)

    return out.reshape(orig_shape)


def init_expert_params(key, n_embed=N_EMBED, dtype=jnp.float32):
    """Deterministic init mimicking torch.nn.Linear default (uniform +/- 1/sqrt(fan_in))."""
    k1, k2, k3, k4 = jax.random.split(key, 4)
    hid = 4 * n_embed
    bound1 = 1.0 / jnp.sqrt(n_embed)
    bound2 = 1.0 / jnp.sqrt(hid)
    # Stored as (in, out) so the kernel computes x @ W (torch stores (out, in)).
    w1 = jax.random.uniform(k1, (n_embed, hid), dtype, -bound1, bound1)
    b1 = jax.random.uniform(k2, (1, hid), dtype, -bound1, bound1)
    w2 = jax.random.uniform(k3, (hid, n_embed), dtype, -bound2, bound2)
    b2 = jax.random.uniform(k4, (1, n_embed), dtype, -bound2, bound2)
    return w1, b1, w2, b2


def prepare_expert_params(w1, b1, w2, b2, matmul_dtype=jnp.bfloat16):
    """One-time cast to the dtypes the kernel consumes (no per-forward casts)."""
    return (w1.astype(matmul_dtype), b1.astype(matmul_dtype),
            w2.astype(matmul_dtype), b2.astype(jnp.float32))


if __name__ == "__main__":
    key = jax.random.PRNGKey(0)
    kx, kp = jax.random.split(key)

    batch, seq = 2, 8
    x = jax.random.normal(kx, (batch, seq, N_EMBED), jnp.float32)
    w1f, b1f, w2f, b2f = init_expert_params(kp)              # f32 torch-like params
    w1, b1, w2, b2 = prepare_expert_params(w1f, b1f, w2f, b2f)  # cast once

    out = expert_forward(x, w1, b1, w2, b2)
    out = jax.block_until_ready(out)
    assert out.shape == x.shape
    assert out.dtype == x.dtype

    # Reference in plain JAX with the same bf16 quantization (eval-mode dropout
    # == identity); both paths accumulate the matmuls in f32.
    xb = x.astype(jnp.bfloat16)
    h_ref = jnp.dot(xb, w1, preferred_element_type=jnp.float32)
    h_ref = jnp.maximum(h_ref.astype(jnp.bfloat16) + b1[0], 0)
    ref = jnp.dot(h_ref, w2, preferred_element_type=jnp.float32) + b2[0]
    assert jnp.allclose(out.reshape(-1, N_EMBED), ref.reshape(-1, N_EMBED),
                        atol=1e-2, rtol=1e-2), "mismatch vs bf16 reference"

    # Looser sanity check against the exact f32 module math (bf16 quantization noise).
    ref_f32 = jnp.maximum(x @ w1f + b1f[0], 0.0) @ w2f + b2f[0]
    assert jnp.allclose(out, ref_f32, atol=5e-2, rtol=5e-2), "mismatch vs f32 reference"

    print("KERNEL_OK")
</pallas_src>

<mosaic_0001>
module attributes {stable_mosaic.version = 11 : i64} {
  func.func @expert_kernel(%arg0: i32, %arg1: memref<16x128xf32, #tpu.memory_space<vmem>>, %arg2: memref<128x512xbf16, #tpu.memory_space<vmem>>, %arg3: memref<1x512xbf16, #tpu.memory_space<vmem>>, %arg4: memref<512x128xbf16, #tpu.memory_space<vmem>>, %arg5: memref<1x128xf32, #tpu.memory_space<vmem>>, %arg6: memref<16x128xf32, #tpu.memory_space<vmem>>) attributes {dimension_semantics = [#tpu.dimension_semantics<parallel>], iteration_bounds = array<i64: 1>, scalar_prefetch = 0 : i64, scratch_operands = 0 : i64, tpu.core_type = #tpu.core_type<tc>, window_params = [{transform_indices = @transform_0, window_bounds = array<i64: 16, 128>}, {pipeline_mode = #tpu.pipeline_mode<synchronous>, transform_indices = @transform_1, window_bounds = array<i64: 128, 512>}, {pipeline_mode = #tpu.pipeline_mode<synchronous>, transform_indices = @transform_2, window_bounds = array<i64: 1, 512>}, {pipeline_mode = #tpu.pipeline_mode<synchronous>, transform_indices = @transform_3, window_bounds = array<i64: 512, 128>}, {pipeline_mode = #tpu.pipeline_mode<synchronous>, transform_indices = @transform_4, window_bounds = array<i64: 1, 128>}, {transform_indices = @transform_5, window_bounds = array<i64: 16, 128>}]} {
    %c0 = arith.constant 0 : index
    %c0_0 = arith.constant 0 : index
    %0 = vector.load %arg1[%c0, %c0_0] : memref<16x128xf32, #tpu.memory_space<vmem>>, vector<16x128xf32>
    %1 = arith.truncf %0 : vector<16x128xf32> to vector<16x128xbf16>
    %c0_1 = arith.constant 0 : index
    %c0_2 = arith.constant 0 : index
    %2 = vector.load %arg2[%c0_1, %c0_2] : memref<128x512xbf16, #tpu.memory_space<vmem>>, vector<128x512xbf16>
    %cst = arith.constant dense<0.000000e+00> : vector<16x512xf32>
    %3 = tpu.matmul %1, %2, %cst {dimension_numbers = #tpu.dot_dimension_numbers<[1], [0], [0], [1], [0, 0, 1, 1], [], []>} : vector<16x128xbf16>, vector<128x512xbf16>, vector<16x512xf32> -> vector<16x512xf32>
    %4 = arith.truncf %3 : vector<16x512xf32> to vector<16x512xbf16>
    %c0_3 = arith.constant 0 : index
    %c0_4 = arith.constant 0 : index
    %5 = vector.load %arg3[%c0_3, %c0_4] : memref<1x512xbf16, #tpu.memory_space<vmem>>, vector<1x512xbf16>
    %6 = vector.broadcast %5 : vector<1x512xbf16> to vector<16x512xbf16>
    %7 = arith.addf %4, %6 : vector<16x512xbf16>
    %cst_5 = arith.constant 0.000000e+00 : bf16
    %8 = vector.broadcast %cst_5 : bf16 to vector<16x512xbf16>
    %9 = arith.maximumf %7, %8 : vector<16x512xbf16>
    %c0_6 = arith.constant 0 : index
    %c0_7 = arith.constant 0 : index
    %10 = vector.load %arg4[%c0_6, %c0_7] : memref<512x128xbf16, #tpu.memory_space<vmem>>, vector<512x128xbf16>
    %cst_8 = arith.constant dense<0.000000e+00> : vector<16x128xf32>
    %11 = tpu.matmul %9, %10, %cst_8 {dimension_numbers = #tpu.dot_dimension_numbers<[1], [0], [0], [1], [0, 0, 1, 1], [], []>} : vector<16x512xbf16>, vector<512x128xbf16>, vector<16x128xf32> -> vector<16x128xf32>
    %c0_9 = arith.constant 0 : index
    %c0_10 = arith.constant 0 : index
    %12 = vector.load %arg5[%c0_9, %c0_10] : memref<1x128xf32, #tpu.memory_space<vmem>>, vector<1x128xf32>
    %13 = vector.broadcast %12 : vector<1x128xf32> to vector<16x128xf32>
    %14 = arith.addf %11, %13 : vector<16x128xf32>
    %c0_11 = arith.constant 0 : index
    %c0_12 = arith.constant 0 : index
    %15 = vector.load %arg6[%c0_11, %c0_12] : memref<16x128xf32, #tpu.memory_space<vmem>>, vector<16x128xf32>
    tpu.vector_store %arg6[%c0_11, %c0_12], %14 {strides = array<i32>} : memref<16x128xf32, #tpu.memory_space<vmem>>, vector<16x128xf32>,
    return
  }
  func.func @transform_0(%arg0: i32) -> (i32, i32) {
    %c0_i32 = arith.constant 0 : i32
    %c0_i32_0 = arith.constant 0 : i32
    return %arg0, %c0_i32 : i32, i32
  }
  func.func @transform_1(%arg0: i32) -> (i32, i32) {
    %c0_i32 = arith.constant 0 : i32
    %c0_i32_0 = arith.constant 0 : i32
    %c0_i32_1 = arith.constant 0 : i32
    return %c0_i32, %c0_i32_0 : i32, i32
  }
  func.func @transform_2(%arg0: i32) -> (i32, i32) {
    %c0_i32 = arith.constant 0 : i32
    %c0_i32_0 = arith.constant 0 : i32
    %c0_i32_1 = arith.constant 0 : i32
    return %c0_i32, %c0_i32_0 : i32, i32
  }
  func.func @transform_3(%arg0: i32) -> (i32, i32) {
    %c0_i32 = arith.constant 0 : i32
    %c0_i32_0 = arith.constant 0 : i32
    %c0_i32_1 = arith.constant 0 : i32
    return %c0_i32, %c0_i32_0 : i32, i32
  }
  func.func @transform_4(%arg0: i32) -> (i32, i32) {
    %c0_i32 = arith.constant 0 : i32
    %c0_i32_0 = arith.constant 0 : i32
    %c0_i32_1 = arith.constant 0 : i32
    return %c0_i32, %c0_i32_0 : i32, i32
  }
  func.func @transform_5(%arg0: i32) -> (i32, i32) {
    %c0_i32 = arith.constant 0 : i32
    %c0_i32_0 = arith.constant 0 : i32
    return %arg0, %c0_i32 : i32, i32
  }
}

</mosaic_0001>

<bundles_post_ra>
// kernel: expert_forward.1
= control target key start
LH: loop header
LB: loop body
LE: loop exit
PB: predicated region body
PF: predicated region fallthrough
CT: control target
= control target key end

     0   :  { %10 = vsyncpa [#allocation3], 0  ;;  %s1264_s0 = inlined_call_operand.hbm [shape: f32[16,128], index: 0, kind: input, shape index: {}]   ;;  %s1265_s1 = inlined_call_operand.hbm [shape: bf16[128,512], index: 1, kind: input, shape index: {}]   ;;  %s1266_s2 = inlined_call_operand.hbm [shape: bf16[1,512], index: 2, kind: input, shape index: {}]   ;;  %s1267_s3 = inlined_call_operand.hbm [shape: bf16[512,128], index: 3, kind: input, shape index: {}]   ;;  %s1268_s4 = inlined_call_operand.vmem [shape: f32[1,128], index: 4, kind: input, shape index: {}]   ;;  %s1269_s5 = inlined_call_operand.hbm [shape: f32[16,128], index: 5, kind: output, shape index: {}]  }
   0x1   :  { %11 = vsyncpa [#allocation6], 0 }
   0x2   :  { %12 = vsyncpa [#allocation9], 0  ;;  %s31_s20 = sshll.u32 %s1265_s1, 4  ;;  %s32_s20 = int_to_ptr.hbm [resolvable:$true] %s31_s20 }
   0x3   :  { %13 = vsyncpa [#allocation4], 0  ;;  %s1199_s21 = smov [#allocation5]   ;;  %s18_s25 = sshll.u32 %s1264_s0, 4  ;;  %s19_s25 = int_to_ptr.hbm [resolvable:$true] %s18_s25 }
   0x4   :  { %s33_s22 = sshll.u32 %s1199_s21, 4  ;;  %s1200_s26 = smov 256   ;;  %s34_s22 = int_to_ptr.vmem [resolvable:$true] %s33_s22 }
   0x5   :  { %s1201_s27 = smov 16   ;;  %s1202_s28 = smov [#allocation2]  }
   0x6   :  { %39 = dma.hbm_to_vmem [thread:$0]  %s32_s20, 4096, %s34_s22, [#allocation6], %s1200_s26, %s1200_s26, %s1201_s27  }
   0x7   :  { %s20_s29 = sshll.u32 %s1202_s28, 4  ;;  %s1203_s30 = smov 128   ;;  %s21_s29 = int_to_ptr.vmem [resolvable:$true] %s20_s29 }
   0x8   :  { %s1204_s6 = smov 8   ;;  %s45_s8 = sshll.u32 %s1266_s2, 4  ;;  %s46_s8 = int_to_ptr.hbm [resolvable:$true] %s45_s8 }
   0x9   :  { %26 = dma.hbm_to_vmem [thread:$0]  %s19_s25, 256, %s21_s29, [#allocation3], %s1203_s30, %s1203_s30, %s1204_s6  }
   0xa   :  { %s1205_s9 = smov [#allocation7]   ;;  %s55_s12 = sshll.u32 %s1267_s3, 4  ;;  %s56_s12 = int_to_ptr.hbm [resolvable:$true] %s55_s12 }
   0xb   :  { %s47_s0 = sshll.u32 %s1205_s9, 4  ;;  %s1206_s13 = smov [#allocation8]   ;;  %s48_s0 = int_to_ptr.vmem [resolvable:$true] %s47_s0 }
   0xc   :  { %50 = dma.hbm_to_vmem [thread:$0]  %s46_s8, 64, %s48_s0, [#allocation6]  }
   0xd   :  { %s57_s14 = sshll.u32 %s1206_s13, 4  ;;  %s1207_s15 = smov 64   ;;  %s58_s14 = int_to_ptr.vmem [resolvable:$true] %s57_s14 }
   0xe   :  { %s1208_s16 = smov 4  }
   0xf   :  { %63 = dma.hbm_to_vmem [thread:$0]  %s56_s12, 4096, %s58_s14, [#allocation9], %s1207_s15, %s1207_s15, %s1208_s16  }
  0x10   :  { %1191 = dma.done.wait [#allocation3], 256  }
  0x11   :  { %1192 = vsyncadd [#allocation3], 4294967040 }
  0x12   :  { %1193 = dma.done.wait [#allocation6], 4160  }
  0x13   :  { %1194 = vsyncadd [#allocation6], 4294963136 }
  0x14   :  { %1195 = dma.done.wait [#allocation9], 4096  }
  0x15   :  { %1196 = vsyncadd [#allocation9], 4294963200  ;;  %v853_v0 = vld [vmem:[#allocation5 + $0xe0] sm:$0xf]  ;;  %v1025_v1 = vld [vmem:[#allocation5 + $0xec] sm:$0xf0] }
  0x16   :  { %v1023_v2 = vld [vmem:[#allocation5 + $0xe4] sm:$0xf]  ;;  %v854_v3 = vor.u32 %v1025_v1, %v853_v0  ;;  %v855_v4 = vld [vmem:[#allocation5 + $0xf0] sm:$0xf0]  ;;  %v861_v5 = vld [vmem:[#allocation5 + $0xe8] sm:$0xf] }
  0x17   :  { %v1026_v6 = vld [vmem:[#allocation5 + $0xf4] sm:$0xf0]  ;;  %v858_v7 = vor.u32 %v1023_v2, %v855_v4  ;;  %v1024_v9 = vld [vmem:[#allocation5 + $0xec] sm:$0xf]  ;;  %v863_v10 = vld [vmem:[#allocation5 + $0xf8] sm:$0xf0] }
  0x18   :  { %v862_v8 = vor.u32 %v1026_v6, %v861_v5  ;;  %v837_v11 = vld [vmem:[#allocation5 + $0xc0] sm:$0xf]  ;;  %277 = vmatpush.bf16.msra.mxu0 %v854_v3  ;;  %v866_v12 = vor.u32 %v1024_v9, %v863_v10  ;;  %v1021_v13 = vld [vmem:[#allocation5 + $0xcc] sm:$0xf0]  ;;  %v1019_v14 = vld [vmem:[#allocation5 + $0xc4] sm:$0xf] }
  0x19   :  { %v839_v15 = vld [vmem:[#allocation5 + $0xd0] sm:$0xf0]  ;;  %291 = vmatpush.bf16.msra.mxu1 %v858_v7  ;;  %v838_v16 = vor.u32 %v1021_v13, %v837_v11  ;;  %v845_v18 = vld [vmem:[#allocation5 + $0xc8] sm:$0xf]  ;;  %v1022_v19 = vld [vmem:[#allocation5 + $0xd4] sm:$0xf0] }
  0x1a   :  { %305 = vmatpush.bf16.msra.mxu2 %v862_v8  ;;  %v842_v17 = vor.u32 %v1019_v14, %v839_v15  ;;  %v1020_v20 = vld [vmem:[#allocation5 + $0xcc] sm:$0xf]  ;;  %319 = vmatpush.bf16.msra.mxu3 %v866_v12  ;;  %v846_v21 = vor.u32 %v1022_v19, %v845_v18  ;;  %v847_v22 = vld [vmem:[#allocation5 + $0xd8] sm:$0xf0]  ;;  %v821_v23 = vld [vmem:[#allocation5 + $0xa0] sm:$0xf] }
  0x1b   :  { %v1017_v24 = vld [vmem:[#allocation5 + $0xac] sm:$0xf0]  ;;  %v850_v25 = vor.u32 %v1020_v20, %v847_v22  ;;  %v1015_v26 = vld [vmem:[#allocation5 + $0xa4] sm:$0xf]  ;;  %v823_v27 = vld [vmem:[#allocation5 + $0xb0] sm:$0xf0] }
  0x1c   :  { %v829_v28 = vld [vmem:[#allocation5 + $0xa8] sm:$0xf]  ;;  %278 = vmatpush.bf16.msra.mxu0 %v838_v16  ;;  %v822_v29 = vor.u32 %v1017_v24, %v821_v23  ;;  %v1018_v30 = vld [vmem:[#allocation5 + $0xb4] sm:$0xf0]  ;;  %v1016_v31 = vld [vmem:[#allocation5 + $0xac] sm:$0xf]  ;;  %v826_v33 = vor.u32 %v1015_v26, %v823_v27 }
  0x1d   :  { %v831_v32 = vld [vmem:[#allocation5 + $0xb8] sm:$0xf0]  ;;  %292 = vmatpush.bf16.msra.mxu1 %v842_v17  ;;  %v830_v34 = vor.u32 %v1018_v30, %v829_v28  ;;  %v805_v35 = vld [vmem:[#allocation5 + $0x80] sm:$0xf]  ;;  %v1013_v36 = vld [vmem:[#allocation5 + $0x8c] sm:$0xf0] }
  0x1e   :  { %306 = vmatpush.bf16.msra.mxu2 %v846_v21  ;;  %v1011_v37 = vld [vmem:[#allocation5 + $0x84] sm:$0xf]  ;;  %320 = vmatpush.bf16.msra.mxu3 %v850_v25  ;;  %v834_v38 = vor.u32 %v1016_v31, %v831_v32  ;;  %v807_v39 = vld [vmem:[#allocation5 + $0x90] sm:$0xf0]  ;;  %v813_v40 = vld [vmem:[#allocation5 + $0x88] sm:$0xf]  ;;  %v806_v44 = vor.u32 %v1013_v36, %v805_v35 }
  0x1f   :  { %v1014_v41 = vld [vmem:[#allocation5 + $0x94] sm:$0xf0]  ;;  %v1012_v42 = vld [vmem:[#allocation5 + $0x8c] sm:$0xf]  ;;  %v815_v43 = vld [vmem:[#allocation5 + $0x98] sm:$0xf0]  ;;  %v810_v45 = vor.u32 %v1011_v37, %v807_v39 }
  0x20   :  { %279 = vmatpush.bf16.msra.mxu0 %v822_v29  ;;  %v814_v46 = vor.u32 %v1014_v41, %v813_v40  ;;  %v789_v47 = vld [vmem:[#allocation5 + $0x60] sm:$0xf]  ;;  %v1009_v48 = vld [vmem:[#allocation5 + $0x6c] sm:$0xf0]  ;;  %v1007_v49 = vld [vmem:[#allocation5 + $0x64] sm:$0xf]  ;;  %v818_v50 = vor.u32 %v1012_v42, %v815_v43 }
  0x21   :  { %293 = vmatpush.bf16.msra.mxu1 %v826_v33  ;;  %v791_v51 = vld [vmem:[#allocation5 + $0x70] sm:$0xf0]  ;;  %v797_v52 = vld [vmem:[#allocation5 + $0x68] sm:$0xf]  ;;  %v1010_v53 = vld [vmem:[#allocation5 + $0x74] sm:$0xf0]  ;;  %v790_v56 = vor.u32 %v1009_v48, %v789_v47 }
  0x22   :  { %307 = vmatpush.bf16.msra.mxu2 %v830_v34  ;;  %321 = vmatpush.bf16.msra.mxu3 %v834_v38  ;;  %v1008_v54 = vld [vmem:[#allocation5 + $0x6c] sm:$0xf]  ;;  %v799_v55 = vld [vmem:[#allocation5 + $0x78] sm:$0xf0]  ;;  %v794_v57 = vor.u32 %v1007_v49, %v791_v51  ;;  %v798_v58 = vor.u32 %v1010_v53, %v797_v52  ;;  %v773_v59 = vld [vmem:[#allocation5 + $0x40] sm:$0xf] }
  0x23   :  { %v1005_v60 = vld [vmem:[#allocation5 + $0x4c] sm:$0xf0]  ;;  %v1003_v61 = vld [vmem:[#allocation5 + $0x44] sm:$0xf]  ;;  %v802_v62 = vor.u32 %v1008_v54, %v799_v55  ;;  %v775_v63 = vld [vmem:[#allocation5 + $0x50] sm:$0xf0] }
  0x24   :  { %280 = vmatpush.bf16.msra.mxu0 %v806_v44  ;;  %v781_v0 = vld [vmem:[#allocation5 + $0x48] sm:$0xf]  ;;  %v1006_v1 = vld [vmem:[#allocation5 + $0x54] sm:$0xf0]  ;;  %v1004_v2 = vld [vmem:[#allocation5 + $0x4c] sm:$0xf]  ;;  %v774_v4 = vor.u32 %v1005_v60, %v773_v59  ;;  %v778_v5 = vor.u32 %v1003_v61, %v775_v63 }
  0x25   :  { %294 = vmatpush.bf16.msra.mxu1 %v810_v45  ;;  %v783_v3 = vld [vmem:[#allocation5 + $0x58] sm:$0xf0]  ;;  %v782_v6 = vor.u32 %v1006_v1, %v781_v0  ;;  %v757_v7 = vld [vmem:[#allocation5 + $0x20] sm:$0xf]  ;;  %v1001_v8 = vld [vmem:[#allocation5 + $0x2c] sm:$0xf0] }
  0x26   :  { %308 = vmatpush.bf16.msra.mxu2 %v814_v46  ;;  %322 = vmatpush.bf16.msra.mxu3 %v818_v50  ;;  %v999_v9 = vld [vmem:[#allocation5 + $0x24] sm:$0xf]  ;;  %v786_v10 = vor.u32 %v1004_v2, %v783_v3  ;;  %v759_v11 = vld [vmem:[#allocation5 + $0x30] sm:$0xf0]  ;;  %v765_v12 = vld [vmem:[#allocation5 + $0x28] sm:$0xf]  ;;  %v758_v16 = vor.u32 %v1001_v8, %v757_v7 }
  0x27   :  { %v1002_v13 = vld [vmem:[#allocation5 + $0x34] sm:$0xf0]  ;;  %v1000_v14 = vld [vmem:[#allocation5 + $0x2c] sm:$0xf]  ;;  %v767_v15 = vld [vmem:[#allocation5 + $0x38] sm:$0xf0]  ;;  %v762_v18 = vor.u32 %v999_v9, %v759_v11 }
  0x28   :  { %281 = vmatpush.bf16.msra.mxu0 %v790_v56  ;;  %v741_v17 = vld [vmem:[#allocation5] sm:$0xf]  ;;  %v766_v19 = vor.u32 %v1002_v13, %v765_v12  ;;  %v997_v20 = vld [vmem:[#allocation5 + $0xc] sm:$0xf0]  ;;  %v995_v21 = vld [vmem:[#allocation5 + $0x4] sm:$0xf]  ;;  %v770_v23 = vor.u32 %v1000_v14, %v767_v15 }
  0x29   :  { %295 = vmatpush.bf16.msra.mxu1 %v794_v57  ;;  %v743_v22 = vld [vmem:[#allocation5 + $0x10] sm:$0xf0]  ;;  %v749_v24 = vld [vmem:[#allocation5 + $0x8] sm:$0xf]  ;;  %v998_v25 = vld [vmem:[#allocation5 + $0x14] sm:$0xf0]  ;;  %v742_v28 = vor.u32 %v997_v20, %v741_v17 }
  0x2a   :  { %309 = vmatpush.bf16.msra.mxu2 %v798_v58  ;;  %323 = vmatpush.bf16.msra.mxu3 %v802_v62  ;;  %v996_v26 = vld [vmem:[#allocation5 + $0xc] sm:$0xf]  ;;  %v751_v27 = vld [vmem:[#allocation5 + $0x18] sm:$0xf0]  ;;  %v82_v29 = vld [vmem:[#allocation2] sm:$0xff]  ;;  %v746_v31 = vor.u32 %v995_v21, %v743_v22  ;;  %v750_v32 = vor.u32 %v998_v25, %v749_v24  ;;  %s1209_s17 = smov [#allocation10]  }
  0x2b   :  { %v83_v30 = vld [vmem:[#allocation2 + $0x8] sm:$0xff]  ;;  %v754_v33 = vor.u32 %v996_v26, %v751_v27  ;;  %v1032_v42 = vld [vmem:[#allocation8 + $0x28] sm:$0xff]  ;;  %v337_v45 = vld [vmem:[#allocation7] sm:$0xf]  ;;  %s722_s18 = sshll.u32 %s1209_s17, 4  ;;  %s724_s21 = sshll.u32 %s1269_s5, 4  ;;  %s723_s18 = int_to_ptr.vmem [resolvable:$true] %s722_s18  ;;  %s725_s21 = int_to_ptr.hbm [resolvable:$true] %s724_s21 }
  0x2c   :  { %282 = vmatpush.bf16.msra.mxu0 %v774_v4  ;;  %v1034_v34 = vld [vmem:[#allocation8 + $0x38] sm:$0xff]  ;;  %v84_v35 = vpack.c.bf16 %v83_v30, %v82_v29  ;;  %v1033_v38 = vld [vmem:[#allocation8 + $0x30] sm:$0xff]  ;;  %v1040_v44 = vld [vmem:[#allocation8 + $0x68] sm:$0xff]  ;;  %339 = vst [vmem:[#allocation1] ss:$9 sm:$0xff] %v337_v45 }
  0x2d   :  { %296 = vmatpush.bf16.msra.mxu1 %v778_v5  ;;  %v1042_v36 = vld [vmem:[#allocation8 + $0x78] sm:$0xff]  ;;  %v1041_v40 = vld [vmem:[#allocation8 + $0x70] sm:$0xff]  ;;  %v1031_v46 = vld [vmem:[#allocation8 + $0x20] sm:$0xff] }
  0x2e   :  { %310 = vmatpush.bf16.msra.mxu2 %v782_v6  ;;  %324 = vmatpush.bf16.msra.mxu3 %v786_v10  ;;  %v1050_v37 = vld [vmem:[#allocation8 + $0xb8] sm:$0xff]  ;;  %v1049_v41 = vld [vmem:[#allocation8 + $0xb0] sm:$0xff]  ;;  %v1039_v47 = vld [vmem:[#allocation8 + $0x60] sm:$0xff] }
  0x2f   :  { %v1058_v39 = vld [vmem:[#allocation8 + $0xf8] sm:$0xff]  ;;  %v1057_v43 = vld [vmem:[#allocation8 + $0xf0] sm:$0xff]  ;;  %v1048_v48 = vld [vmem:[#allocation8 + $0xa8] sm:$0xff] }
  0x30   :  { %283 = vmatpush.bf16.msra.mxu0 %v758_v16  ;;  %v1056_v49 = vld [vmem:[#allocation8 + $0xe8] sm:$0xff]  ;;  %v1030_v50 = vld [vmem:[#allocation8 + $0x18] sm:$0xff]  ;;  %v1047_v52 = vld [vmem:[#allocation8 + $0xa0] sm:$0xff] }
  0x31   :  { %297 = vmatpush.bf16.msra.mxu1 %v762_v18  ;;  %v1038_v51 = vld [vmem:[#allocation8 + $0x58] sm:$0xff]  ;;  %v1055_v53 = vld [vmem:[#allocation8 + $0xe0] sm:$0xff]  ;;  %v1029_v54 = vld [vmem:[#allocation8 + $0x10] sm:$0xff] }
  0x32   :  { %311 = vmatpush.bf16.msra.mxu2 %v766_v19  ;;  %325 = vmatpush.bf16.msra.mxu3 %v770_v23  ;;  %v1037_v55 = vld [vmem:[#allocation8 + $0x50] sm:$0xff]  ;;  %v1046_v56 = vld [vmem:[#allocation8 + $0x98] sm:$0xff]  ;;  %v1028_v58 = vld [vmem:[#allocation8 + $0x8] sm:$0xff] }
  0x33   :  { %v1054_v57 = vld [vmem:[#allocation8 + $0xd8] sm:$0xff]  ;;  %v1036_v59 = vld [vmem:[#allocation8 + $0x48] sm:$0xff]  ;;  %v1045_v60 = vld [vmem:[#allocation8 + $0x90] sm:$0xff] }
  0x34   :  { %284 = vmatpush.bf16.msra.mxu0 %v742_v28  ;;  %v1053_v61 = vld [vmem:[#allocation8 + $0xd0] sm:$0xff]  ;;  %v1027_v62 = vld [vmem:[#allocation8] sm:$0xff]  ;;  %v1044_v0 = vld [vmem:[#allocation8 + $0x88] sm:$0xff] }
  0x35   :  { %298 = vmatpush.bf16.msra.mxu1 %v746_v31  ;;  %v1035_v63 = vld [vmem:[#allocation8 + $0x40] sm:$0xff]  ;;  %v1052_v1 = vld [vmem:[#allocation8 + $0xc8] sm:$0xff]  ;;  %v342_v13 = vld [vmem:[#allocation1 + $0x12] sm:$0xff] }
  0x36   :  { %312 = vmatpush.bf16.msra.mxu2 %v750_v32  ;;  %326 = vmatpush.bf16.msra.mxu3 %v754_v33  ;;  %v1043_v2 = vld [vmem:[#allocation8 + $0x80] sm:$0xff]  ;;  %v341_v5 = vld [vmem:[#allocation1 + $0x9] sm:$0xff]  ;;  %v350_v20 = vpack.i.b16 %v342_v13, %v342_v13 }
  0x37   :  { %285 = vmatmul.bf16.vlgmr.msra.gmra.mxu0 %v84_v35  ;;  %v1051_v3 = vld [vmem:[#allocation8 + $0xc0] sm:$0xff]  ;;  %v347_v7 = vpack.i.b16 %v341_v5, %v341_v5 }
  0x38   :  { %660 = vmatpush.bf16.msrb.mxu0 %v1034_v34  ;;  %299 = vmatmul.bf16.vlgmr.msra.gmra.mxu1 %v84_v35  ;;  %v340_v4 = vld [vmem:[#allocation1] sm:$0xff]  ;;  %v352_v29 = vperm.slane %v350_v20, 0 }
  0x39   :  { %674 = vmatpush.bf16.msrb.mxu1 %v1042_v36  ;;  %313 = vmatmul.bf16.vlgmr.msra.gmra.mxu2 %v84_v35  ;;  %v344_v6 = vpack.i.b16 %v340_v4, %v340_v4  ;;  %v349_v12 = vperm.slane %v347_v7, 0  ;;  %v343_v14 = vld [vmem:[#allocation1 + $0x1b] sm:$0xff] }
  0x3a   :  { %327 = vmatmul.bf16.vlgmr.msra.gmra.mxu3 %v84_v35  ;;  %688 = vmatpush.bf16.msrb.mxu2 %v1050_v37  ;;  %v353_v21 = vpack.i.b16 %v343_v14, %v343_v14 }
  0x3b   :  { %702 = vmatpush.bf16.msrb.mxu3 %v1058_v39  ;;  %v346_v11 = vperm.slane %v344_v6, 0  ;;  %v365_v18 = vunpack.c.l.bf16 %v349_v12  ;;  %v366_v39 = vunpack.c.l.bf16 %v352_v29 }
  0x3c   :  { %661 = vmatpush.bf16.msrb.mxu0 %v1033_v38  ;;  %v355_v30 = vperm.slane %v353_v21, 0 }
  0x3d   :  { %675 = vmatpush.bf16.msrb.mxu1 %v1041_v40  ;;  %v364_v17 = vunpack.c.l.bf16 %v346_v11 }
  0x3e   :  { %689 = vmatpush.bf16.msrb.mxu2 %v1049_v41  ;;  %v367_v40 = vunpack.c.l.bf16 %v355_v30 }
  0x3f   :  { %703 = vmatpush.bf16.msrb.mxu3 %v1057_v43 }
  0x40   :  { %662 = vmatpush.bf16.msrb.mxu0 %v1032_v42 }
  0x41   :  { %676 = vmatpush.bf16.msrb.mxu1 %v1040_v44 }
  0x42   :  { %690 = vmatpush.bf16.msrb.mxu2 %v1048_v48 }
  0x43   :  { %704 = vmatpush.bf16.msrb.mxu3 %v1056_v49 }
  0x44   :  { %663 = vmatpush.bf16.msrb.mxu0 %v1031_v46 }
  0x45   :  { %677 = vmatpush.bf16.msrb.mxu1 %v1039_v47 }
  0x46   :  { %691 = vmatpush.bf16.msrb.mxu2 %v1047_v52 }
  0x47   :  { %705 = vmatpush.bf16.msrb.mxu3 %v1055_v53 }
  0x48   :  { %664 = vmatpush.bf16.msrb.mxu0 %v1030_v50 }
  0x49   :  { %678 = vmatpush.bf16.msrb.mxu1 %v1038_v51 }
  0x4a   :  { %692 = vmatpush.bf16.msrb.mxu2 %v1046_v56 }
  0x4b   :  { %706 = vmatpush.bf16.msrb.mxu3 %v1054_v57 }
  0x4c   :  { %665 = vmatpush.bf16.msrb.mxu0 %v1029_v54 }
  0x4d   :  { %679 = vmatpush.bf16.msrb.mxu1 %v1037_v55 }
  0x4e   :  { %693 = vmatpush.bf16.msrb.mxu2 %v1045_v60 }
  0x4f   :  { %707 = vmatpush.bf16.msrb.mxu3 %v1053_v61  ;;  %v1070_v61 = vld [vmem:[%s1268_s4] ss:$0 sm:$0xff] }
  0x50   :  { %666 = vmatpush.bf16.msrb.mxu0 %v1028_v58 }
  0x51   :  { %680 = vmatpush.bf16.msrb.mxu1 %v1036_v59 }
  0x52   :  { %694 = vmatpush.bf16.msrb.mxu2 %v1044_v0 }
  0x53   :  { %708 = vmatpush.bf16.msrb.mxu3 %v1052_v1 }
  0x54   :  { %667 = vmatpush.bf16.msrb.mxu0 %v1027_v62 }
  0x55   :  { %681 = vmatpush.bf16.msrb.mxu1 %v1035_v63 }
  0x56   :  { %695 = vmatpush.bf16.msrb.mxu2 %v1043_v2 }
  0x57   :  { %709 = vmatpush.bf16.msrb.mxu3 %v1051_v3 }
  0xb4   :  { %v286_v8 = vpop.f32.mrf.mxu0 }
  0xb5   :  { %v300_v9 = vpop.f32.mrf.mxu1 }
  0xb6   :  { %v333_v10 = vpack.c.bf16 %v300_v9, %v286_v8 }
  0xb8   :  { %v356_v15 = vunpack.c.l.bf16 %v333_v10  ;;  %v357_v16 = vunpack.c.h.bf16 %v333_v10 }
  0xba   :  { %v368_v25 = vadd.f32 %v364_v17, %v356_v15  ;;  %v369_v26 = vadd.f32 %v365_v18, %v357_v16 }
  0xbc   :  { %v314_v19 = vpop.f32.mrf.mxu2  ;;  %v288_v23 = vpop.f32.mrf.mxu0  ;;  %v388_v33 = vmax.f32 %v368_v25, 0.0  ;;  %v389_v34 = vmax.f32 %v369_v26, 0.0 }
  0xbd   :  { %v328_v22 = vpop.f32.mrf.mxu3  ;;  %v302_v24 = vpop.f32.mrf.mxu1 }
  0xbe   :  { %v335_v27 = vpack.c.bf16 %v302_v24, %v288_v23  ;;  %v334_v28 = vpack.c.bf16 %v328_v22, %v314_v19 }
  0xc0   :  { %v360_v31 = vunpack.c.l.bf16 %v335_v27  ;;  %v361_v32 = vunpack.c.h.bf16 %v335_v27  ;;  %v358_v37 = vunpack.c.l.bf16 %v334_v28  ;;  %v359_v38 = vunpack.c.h.bf16 %v334_v28 }
  0xc2   :  { %v372_v35 = vadd.f32 %v364_v17, %v360_v31  ;;  %v373_v36 = vadd.f32 %v365_v18, %v361_v32  ;;  %v370_v48 = vadd.f32 %v366_v39, %v358_v37  ;;  %v371_v49 = vadd.f32 %v367_v40, %v359_v38 }
  0xc4   :  { %v316_v41 = vpop.f32.mrf.mxu2  ;;  %v392_v42 = vmax.f32 %v372_v35, 0.0  ;;  %v393_v43 = vmax.f32 %v373_v36, 0.0  ;;  %v390_v54 = vmax.f32 %v370_v48, 0.0  ;;  %v391_v55 = vmax.f32 %v371_v49, 0.0 }
  0xc5   :  { %v330_v44 = vpop.f32.mrf.mxu3 }
  0xc6   :  { %v336_v45 = vpack.c.bf16 %v330_v44, %v316_v41  ;;  %v396_v46 = vpack.c.bf16 %v392_v42, %v388_v33  ;;  %v397_v47 = vpack.c.bf16 %v393_v43, %v389_v34 }
  0xc8   :  { %v362_v50 = vunpack.c.l.bf16 %v336_v45  ;;  %v363_v51 = vunpack.c.h.bf16 %v336_v45  ;;  %668 = vmatmul.bf16.vlgmr.msrb.gmra.mxu0 %v396_v46  ;;  %682 = vmatmul.bf16.vlgmr.msrb.gmra.mxu1 %v397_v47 }
  0xca   :  { %v374_v52 = vadd.f32 %v366_v39, %v362_v50  ;;  %v375_v53 = vadd.f32 %v367_v40, %v363_v51 }
  0xcc   :  { %v394_v56 = vmax.f32 %v374_v52, 0.0  ;;  %v395_v57 = vmax.f32 %v375_v53, 0.0 }
  0xce   :  { %v398_v58 = vpack.c.bf16 %v394_v56, %v390_v54  ;;  %v399_v59 = vpack.c.bf16 %v395_v57, %v391_v55 }
  0xd0   :  { %696 = vmatmul.bf16.vlgmr.msrb.gmra.mxu2 %v398_v58  ;;  %710 = vmatmul.bf16.vlgmr.msrb.gmra.mxu3 %v399_v59 }
 0x145   :  { %v669_v60 = vpop.f32.mrf.mxu0  ;;  %v683_v63 = vpop.f32.mrf.mxu1 }
 0x146   :  { %v670_v62 = vadd.f32 %v1070_v61, %v669_v60 }
 0x148   :  { %v684_v0 = vadd.f32 %v683_v63, %v670_v62 }
 0x14d   :  { %v671_v1 = vpop.f32.mrf.mxu0  ;;  %v685_v7 = vpop.f32.mrf.mxu1 }
 0x14e   :  { %v672_v5 = vadd.f32 %v1070_v61, %v671_v1 }
 0x150   :  { %v686_v8 = vadd.f32 %v685_v7, %v672_v5 }
 0x153   :  { %v697_v2 = vpop.f32.mrf.mxu2  ;;  %v711_v3 = vpop.f32.mrf.mxu3 }
 0x154   :  { %v698_v4 = vadd.f32 %v697_v2, %v684_v0 }
 0x156   :  { %v712_v6 = vadd.f32 %v711_v3, %v698_v4 }
 0x158   :  { %716 = vst [vmem:[#allocation10] sm:$0xff] %v712_v6 }
 0x15b   :  { %v699_v9 = vpop.f32.mrf.mxu2  ;;  %v713_v11 = vpop.f32.mrf.mxu3 }
 0x15c   :  { %v700_v10 = vadd.f32 %v699_v9, %v686_v8 }
 0x15e   :  { %v714_v12 = vadd.f32 %v713_v11, %v700_v10 }
 0x160   :  { %717 = vst [vmem:[#allocation10 + $0x8] sm:$0xff] %v714_v12 }
 0x161   :  { %730 = dma.vmem_to_hbm [thread:$0]  %s723_s18, 256, %s725_s21, [#allocation4], %s1203_s30, %s1203_s30, %s1204_s6  }
 0x162   :  { %1197 = dma.done.wait [#allocation4], 256  }
 0x163   :  { %1198 = vsyncadd [#allocation4], 4294967040 }
 0x164   :  { %735 = vsyncpa [#allocation3], 1 }
 0x165   :  { %736 = vsyncpa [#allocation6], 1 }
 0x166   :  { %737 = vsyncpa [#allocation9], 1 }
 0x167   :  { %738 = vsyncpa [#allocation4], 1 }

</bundles_post_ra>
